<compile_context>
chip_gen: v5e
topology: v5e:2x2
jax: 0.10.0
libtpu: 0.0.40
codegen_flags: <defaults>
</compile_context>

<pallas_src>
import functools

import jax
import jax.numpy as jnp
from jax import lax
from jax.experimental import pallas as pl
from jax.experimental.pallas import tpu as pltpu


def cnn_kernel(ids_ref, emb_ref, w_ref, p_ref, o_ref, *, B, S, fs1, fs2):
    """Fused embedding-gather + dual conv + ReLU + max-pool + linear + sigmoid.

    ids_ref : (B*S, 1)     int32 VMEM  token ids
    emb_ref : (Vpad, D)    f32   VMEM  embedding table (vocab padded to 128 lanes)
    w_ref   : (fs_max*D, 2F) bf16 VMEM both conv branches packed along K / N
    p_ref   : (3, 2F)      f32   VMEM  row0 = conv bias, row1 = linear weight,
                                       row2[0] = linear bias
    o_ref   : (B, 1)       f32   VMEM  sigmoid(linear(maxpool(relu(conv(x)))))
    """
    BS = B * S
    Vpad, D = emb_ref.shape
    F2 = w_ref.shape[1]              # 2 * n_filters
    F = F2 // 2
    fs_max = max(fs1, fs2)

    # ---- embedding gather as ONE one-hot MXU matmul (no scalar loop, no scratch) ----
    ids = ids_ref[...]                                              # (BS, 1) int32
    lane = lax.broadcasted_iota(jnp.int32, (BS, Vpad), 1)           # in-kernel iota
    onehot = (lane == ids).astype(jnp.float32)                      # (BS, Vpad)
    x = jnp.dot(onehot, emb_ref[...],
                preferred_element_type=jnp.float32)                 # (BS, D) f32

    # ---- im2col: lane-concat of sublane-shifted copies (wrapped rows masked later) ----
    parts = [x]
    for k in range(1, fs_max):
        parts.append(jnp.concatenate([x[k:, :], x[:k, :]], axis=0))
    xim = jnp.concatenate(parts, axis=1).astype(jnp.bfloat16)       # (BS, fs_max*D)

    # ---- both conv branches as ONE MXU matmul (K = fs_max*D), f32 accumulation ----
    bias = p_ref[0:1, :]                                            # (1, 2F)
    acc = jnp.dot(xim, w_ref[...], preferred_element_type=jnp.float32) + bias
    acc = jnp.maximum(acc, 0.0)                                     # ReLU (f32)

    # ---- zero invalid / wrapped rows per branch, then max-over-time pool ----
    # NOTE: zero-masking (instead of -inf) is only valid because values are
    # post-ReLU (>= 0) and S >= fs for both branches (each batch has >=1 valid row).
    acc3 = acc.reshape(B, S, F2)                                    # layout-free view
    pos = lax.broadcasted_iota(jnp.int32, (B, S, F2), 1)            # time position
    col = lax.broadcasted_iota(jnp.int32, (B, S, F2), 2)            # filter column
    lim = jnp.where(col < F, S - fs1, S - fs2)                      # valid-row limit
    acc3 = jnp.where(pos <= lim, acc3, 0.0)
    feat = jnp.max(acc3, axis=1)                                    # (B, 2F)

    # ---- linear (lane reduction, stays off the MXU) + sigmoid ----
    wl = p_ref[1:2, :]                                              # (1, 2F)
    bl = p_ref[2:3, 0:1]                                            # (1, 1)
    logits = jnp.sum(feat * wl, axis=-1, keepdims=True) + bl        # (B, 1)
    o_ref[...] = jax.nn.sigmoid(logits)


@jax.jit
def cnn_forward(ids, emb_table, w1, b1, w2, b2, wl, bl):
    B, S = ids.shape
    V, D = emb_table.shape
    fs1, fs2 = w1.shape[0], w2.shape[0]
    F = w1.shape[2]
    fs_max = max(fs1, fs2)
    K = fs_max * D
    assert S >= fs_max, "post-ReLU zero-mask pooling requires S >= max filter size"

    # Pad vocab to a multiple of 128 lanes so the one-hot operand is lane-dense.
    # TODO(synk): for realistic vocab sizes keep the table in HBM (pl.ANY) and
    # DMA-gather the B*S needed rows (PrefetchScalarGridSpec) instead of one-hot.
    Vpad = max(128, ((V + 127) // 128) * 128)
    emb_pad = jnp.zeros((Vpad, D), jnp.float32).at[:V, :].set(
        emb_table.astype(jnp.float32))

    # Pack both conv weights into one (fs_max*D, 2F) bf16 matrix; taps beyond a
    # branch's filter size are zero rows, so they never contribute.
    def pad_to_K(w):
        flat = w.reshape(w.shape[0] * D, F).astype(jnp.float32)
        pad = jnp.zeros((K - flat.shape[0], F), jnp.float32)
        return jnp.concatenate([flat, pad], axis=0)

    w_comb = jnp.concatenate([pad_to_K(w1), pad_to_K(w2)], axis=1).astype(jnp.bfloat16)

    # Single small f32 parameter tile: conv bias / linear weight / linear bias.
    params = jnp.zeros((3, 2 * F), jnp.float32)
    params = params.at[0, :].set(jnp.concatenate([b1, b2], axis=1).reshape(-1))
    params = params.at[1, :].set(wl.reshape(-1))
    params = params.at[2, 0].set(bl.reshape(()))

    kernel = functools.partial(cnn_kernel, B=B, S=S, fs1=fs1, fs2=fs2)
    return pl.pallas_call(
        kernel,
        out_shape=jax.ShapeDtypeStruct((B, 1), jnp.float32),
        in_specs=[pl.BlockSpec(memory_space=pltpu.MemorySpace.VMEM)] * 4,
        out_specs=pl.BlockSpec(memory_space=pltpu.MemorySpace.VMEM),
    )(ids.reshape(B * S, 1).astype(jnp.int32), emb_pad, w_comb, params)


def cnn_reference(ids, emb_table, w1, b1, w2, b2, wl, bl):
    """Plain-JAX reference mirroring the PyTorch forward semantics (same
    bf16-operand / f32-accumulate precision choice as the kernel)."""
    x = emb_table[ids]                                    # (B, S, D) f32
    xb = x.astype(jnp.bfloat16)

    def branch(w, bvec):
        fs, _, F = w.shape
        L = x.shape[1] - fs + 1
        wb = w.astype(jnp.bfloat16)
        conv = bvec + sum(
            jnp.einsum('bld,df->blf', xb[:, k:k + L, :], wb[k],
                       preferred_element_type=jnp.float32)
            for k in range(fs))
        conv = jnp.maximum(conv, 0.0)
        return jnp.max(conv, axis=1)                      # (B, F)

    feat = jnp.concatenate([branch(w1, b1), branch(w2, b2)], axis=1)   # (B, 2F)
    logits = jnp.sum(feat * wl, axis=-1, keepdims=True) + bl           # (B, 1)
    return jax.nn.sigmoid(logits)


if __name__ == "__main__":
    # embedding_dim must equal 2 * n_filters for the module's Linear(embedding_dim, 1)
    # to consume the concatenated pooled features (implicit constraint of the module).
    B, S, V, D, F = 2, 8, 50, 32, 16
    FS = (3, 4)                                           # filter_sizes

    key = jax.random.PRNGKey(0)
    k = jax.random.split(key, 8)
    emb_table = jax.random.normal(k[0], (V, D), jnp.float32)          # vocab.vectors
    w1 = jax.random.normal(k[1], (FS[0], D, F), jnp.float32) * 0.1    # conv1 weight (fs,D,F)
    b1 = jax.random.normal(k[2], (1, F), jnp.float32) * 0.1           # conv1 bias
    w2 = jax.random.normal(k[3], (FS[1], D, F), jnp.float32) * 0.1    # conv2 weight
    b2 = jax.random.normal(k[4], (1, F), jnp.float32) * 0.1           # conv2 bias
    wl = jax.random.normal(k[5], (1, 2 * F), jnp.float32) * 0.1       # linear weight (1, 2F)
    bl = jax.random.normal(k[6], (1, 1), jnp.float32) * 0.1           # linear bias
    ids = jax.random.randint(k[7], (B, S), 0, V)                      # token ids

    out = jax.block_until_ready(cnn_forward(ids, emb_table, w1, b1, w2, b2, wl, bl))
    ref = jax.block_until_ready(cnn_reference(ids, emb_table, w1, b1, w2, b2, wl, bl))

    assert out.shape == (B, 1), out.shape
    assert jnp.allclose(out, ref, atol=1e-3, rtol=1e-3), (out, ref)
    print("KERNEL_OK")
</pallas_src>

<mosaic_0001>
module attributes {stable_mosaic.version = 11 : i64} {
  func.func @cnn_kernel(%arg0: memref<16x1xi32, #tpu.memory_space<vmem>>, %arg1: memref<128x32xf32, #tpu.memory_space<vmem>>, %arg2: memref<128x32xbf16, #tpu.memory_space<vmem>>, %arg3: memref<3x32xf32, #tpu.memory_space<vmem>>, %arg4: memref<2x1xf32, #tpu.memory_space<vmem>>) attributes {dimension_semantics = [], scalar_prefetch = 0 : i64, scratch_operands = 0 : i64, tpu.core_type = #tpu.core_type<tc>} {
    %c0 = arith.constant 0 : index
    %c0_0 = arith.constant 0 : index
    %0 = vector.load %arg0[%c0, %c0_0] : memref<16x1xi32, #tpu.memory_space<vmem>>, vector<16x1xi32>
    %1 = tpu.iota {dimensions = array<i32: 1>} : vector<16x128xi32>
    %2 = vector.broadcast %0 : vector<16x1xi32> to vector<16x128xi32>
    %3 = arith.cmpi eq, %1, %2 : vector<16x128xi32>
    %4 = arith.extui %3 : vector<16x128xi1> to vector<16x128xi32>
    %5 = arith.sitofp %4 : vector<16x128xi32> to vector<16x128xf32>
    %c0_1 = arith.constant 0 : index
    %c0_2 = arith.constant 0 : index
    %6 = vector.load %arg1[%c0_1, %c0_2] : memref<128x32xf32, #tpu.memory_space<vmem>>, vector<128x32xf32>
    %cst = arith.constant dense<0.000000e+00> : vector<16x32xf32>
    %7 = tpu.matmul %5, %6, %cst {dimension_numbers = #tpu.dot_dimension_numbers<[1], [0], [0], [1], [0, 0, 1, 1], [], []>} : vector<16x128xf32>, vector<128x32xf32>, vector<16x32xf32> -> vector<16x32xf32>
    %8 = vector.extract_strided_slice %7 {offsets = [1, 0], sizes = [15, 32], strides = [1, 1]} : vector<16x32xf32> to vector<15x32xf32>
    %9 = vector.extract_strided_slice %7 {offsets = [0, 0], sizes = [1, 32], strides = [1, 1]} : vector<16x32xf32> to vector<1x32xf32>
    %10 = tpu.concatenate %8, %9 in 0 : vector<15x32xf32>, vector<1x32xf32> -> vector<16x32xf32>
    %11 = vector.extract_strided_slice %7 {offsets = [2, 0], sizes = [14, 32], strides = [1, 1]} : vector<16x32xf32> to vector<14x32xf32>
    %12 = vector.extract_strided_slice %7 {offsets = [0, 0], sizes = [2, 32], strides = [1, 1]} : vector<16x32xf32> to vector<2x32xf32>
    %13 = tpu.concatenate %11, %12 in 0 : vector<14x32xf32>, vector<2x32xf32> -> vector<16x32xf32>
    %14 = vector.extract_strided_slice %7 {offsets = [3, 0], sizes = [13, 32], strides = [1, 1]} : vector<16x32xf32> to vector<13x32xf32>
    %15 = vector.extract_strided_slice %7 {offsets = [0, 0], sizes = [3, 32], strides = [1, 1]} : vector<16x32xf32> to vector<3x32xf32>
    %16 = tpu.concatenate %14, %15 in 0 : vector<13x32xf32>, vector<3x32xf32> -> vector<16x32xf32>
    %17 = tpu.concatenate %7, %10, %13, %16 in 1 : vector<16x32xf32>, vector<16x32xf32>, vector<16x32xf32>, vector<16x32xf32> -> vector<16x128xf32>
    %18 = arith.truncf %17 : vector<16x128xf32> to vector<16x128xbf16>
    %c0_3 = arith.constant 0 : index
    %c0_4 = arith.constant 0 : index
    %19 = vector.load %arg3[%c0_3, %c0_4] : memref<3x32xf32, #tpu.memory_space<vmem>>, vector<1x32xf32>
    %c0_5 = arith.constant 0 : index
    %c0_6 = arith.constant 0 : index
    %20 = vector.load %arg2[%c0_5, %c0_6] : memref<128x32xbf16, #tpu.memory_space<vmem>>, vector<128x32xbf16>
    %cst_7 = arith.constant dense<0.000000e+00> : vector<16x32xf32>
    %21 = tpu.matmul %18, %20, %cst_7 {dimension_numbers = #tpu.dot_dimension_numbers<[1], [0], [0], [1], [0, 0, 1, 1], [], []>} : vector<16x128xbf16>, vector<128x32xbf16>, vector<16x32xf32> -> vector<16x32xf32>
    %22 = vector.broadcast %19 : vector<1x32xf32> to vector<16x32xf32>
    %23 = arith.addf %21, %22 : vector<16x32xf32>
    %cst_8 = arith.constant 0.000000e+00 : f32
    %24 = vector.broadcast %cst_8 : f32 to vector<16x32xf32>
    %25 = arith.maximumf %23, %24 : vector<16x32xf32>
    %26 = vector.shape_cast %25 : vector<16x32xf32> to vector<2x8x32xf32>
    %27 = tpu.iota {dimensions = array<i32: 1>} : vector<2x8x32xi32>
    %28 = tpu.iota {dimensions = array<i32: 2>} : vector<2x8x32xi32>
    %c16_i32 = arith.constant 16 : i32
    %29 = vector.broadcast %c16_i32 : i32 to vector<2x8x32xi32>
    %30 = arith.cmpi slt, %28, %29 : vector<2x8x32xi32>
    %c5_i32 = arith.constant 5 : i32
    %c4_i32 = arith.constant 4 : i32
    %31 = vector.broadcast %c5_i32 : i32 to vector<2x8x32xi32>
    %32 = vector.broadcast %c4_i32 : i32 to vector<2x8x32xi32>
    %33 = arith.select %30, %31, %32 : vector<2x8x32xi1>, vector<2x8x32xi32>
    %34 = arith.cmpi sle, %27, %33 : vector<2x8x32xi32>
    %cst_9 = arith.constant 0.000000e+00 : f32
    %35 = vector.broadcast %cst_9 : f32 to vector<2x8x32xf32>
    %36 = arith.select %34, %26, %35 : vector<2x8x32xi1>, vector<2x8x32xf32>
    %cst_10 = arith.constant dense<0xFF800000> : vector<2x32xf32>
    %37 = vector.multi_reduction <maximumf>, %36, %cst_10 [1] : vector<2x8x32xf32> to vector<2x32xf32>
    %c1 = arith.constant 1 : index
    %c0_11 = arith.constant 0 : index
    %38 = vector.load %arg3[%c1, %c0_11] : memref<3x32xf32, #tpu.memory_space<vmem>>, vector<1x32xf32>
    %c2 = arith.constant 2 : index
    %c0_12 = arith.constant 0 : index
    %39 = vector.load %arg3[%c2, %c0_12] : memref<3x32xf32, #tpu.memory_space<vmem>>, vector<1x1xf32>
    %40 = vector.broadcast %38 : vector<1x32xf32> to vector<2x32xf32>
    %41 = arith.mulf %37, %40 : vector<2x32xf32>
    %cst_13 = arith.constant dense<0.000000e+00> : vector<2xf32>
    %42 = vector.multi_reduction <add>, %41, %cst_13 [1] : vector<2x32xf32> to vector<2xf32>
    %43 = vector.shape_cast %42 : vector<2xf32> to vector<2x1xf32>
    %44 = vector.broadcast %39 : vector<1x1xf32> to vector<2x1xf32>
    %45 = arith.addf %43, %44 : vector<2x1xf32>
    %46 = arith.negf %45 : vector<2x1xf32>
    %47 = math.exp %46 : vector<2x1xf32>
    %cst_14 = arith.constant 1.000000e+00 : f32
    %48 = vector.broadcast %cst_14 : f32 to vector<2x1xf32>
    %49 = arith.addf %48, %47 : vector<2x1xf32>
    %50 = arith.divf %48, %49 : vector<2x1xf32>
    %c0_15 = arith.constant 0 : index
    %c0_16 = arith.constant 0 : index
    %51 = vector.load %arg4[%c0_15, %c0_16] : memref<2x1xf32, #tpu.memory_space<vmem>>, vector<2x1xf32>
    tpu.vector_store %arg4[%c0_15, %c0_16], %50 {strides = array<i32>} : memref<2x1xf32, #tpu.memory_space<vmem>>, vector<2x1xf32>,
    return
  }
}

</mosaic_0001>

<bundles_post_ra>
// kernel: cnn_forward.1
= control target key start
LH: loop header
LB: loop body
LE: loop exit
PB: predicated region body
PF: predicated region fallthrough
CT: control target
= control target key end

     0   :  { %v361_v0 = vmov 0   ;;  %v19_v19 = vlaneseq  ;;  %v362_v22 = vmov 1.0   ;;  %vm88_vm2 = vcmask 1044480   ;;  %s364_s24 = smov 32   ;;  %s365_s25 = smov 64   ;;  %s493_s0 = inlined_call_operand.vmem [shape: s32[16,1], index: 0, kind: input, shape index: {}]   ;;  %s494_s1 = inlined_call_operand.vmem [shape: f32[128,32], index: 1, kind: input, shape index: {}]   ;;  %s495_s3 = inlined_call_operand.vmem [shape: f32[3,32], index: 3, kind: input, shape index: {}]   ;;  %s496_s2 = inlined_call_operand.vmem [shape: bf16[128,32], index: 2, kind: input, shape index: {}]   ;;  %s497_s4 = inlined_call_operand.vmem [shape: f32[2,1], index: 4, kind: output, shape index: {}]  }
   0x1   :  { %338 = vset.pattern.permute.xlu0 %v361_v0  ;;  %v18_v1 = vld [vmem:[%s493_s0 + $0x8] sm:$0xff]  ;;  %v48_v2 = vld [vmem:[%s494_s1 + $0x78] sm:$0xff]  ;;  %v47_v3 = vld [vmem:[%s494_s1 + $0x70] sm:$0xff]  ;;  %vm74_vm3 = vcmask 1046528   ;;  %vm81_vm4 = vcmask 1045504   ;;  %vm116_vm5 = vcmask 261120  }
   0x2   :  { %25 = vperm.xlu0 %338, %v18_v1   ;;  %316 = vmatpush.msra.mxu2 %v48_v2  ;;  %v46_v4 = vld [vmem:[%s494_s1 + $0x68] sm:$0xff]  ;;  %v45_v5 = vld [vmem:[%s494_s1 + $0x60] sm:$0xff]  ;;  %v44_v7 = vld [vmem:[%s494_s1 + $0x58] sm:$0xff]  ;;  %v447_v20 = vand.u32 127, %v19_v19  ;;  %vm119_vm6 = vcmask 523264   ;;  %vm122_vm7 = vcmask 785408  }
   0x3   :  { %49 = vmatpush.msra.mxu0 %v48_v2  ;;  %v17_v6 = vld [vmem:[%s493_s0] sm:$0xff]  ;;  %v43_v8 = vld [vmem:[%s494_s1 + $0x50] sm:$0xff]  ;;  %v42_v9 = vld [vmem:[%s494_s1 + $0x48] sm:$0xff]  ;;  %v209_v2 = vshrl.u32 %v19_v19, 7  ;;  %vm237_vm10 = vcmask 1041409   ;;  %vm240_vm11 = vcmask 254976  }
   0x4   :  { %317 = vmatpush.msra.mxu2 %v47_v3  ;;  %v41_v10 = vld [vmem:[%s494_s1 + $0x40] sm:$0xff]  ;;  %v40_v11 = vld [vmem:[%s494_s1 + $0x38] sm:$0xff]  ;;  %v39_v12 = vld [vmem:[%s494_s1 + $0x30] sm:$0xff]  ;;  %vm210_vm8 = vcmp.lt.s32.totalorder %v447_v20, 16  ;;  %vm265_vm14 = vcmask 1024  }
   0x5   :  { %50 = vmatpush.msra.mxu0 %v47_v3  ;;  %v38_v13 = vld [vmem:[%s494_s1 + $0x28] sm:$0xff]  ;;  %v37_v14 = vld [vmem:[%s494_s1 + $0x20] sm:$0xff]  ;;  %v36_v15 = vld [vmem:[%s494_s1 + $0x18] sm:$0xff]  ;;  %v366_v3 = vmov 4  }
   0x6   :  { %318 = vmatpush.msra.mxu2 %v46_v4  ;;  %v35_v16 = vld [vmem:[%s494_s1 + $0x10] sm:$0xff]  ;;  %v34_v17 = vld [vmem:[%s494_s1 + $0x8] sm:$0xff]  ;;  %v33_v18 = vld [vmem:[%s494_s1] sm:$0xff]  ;;  %s363_s1 = smov 96  }
   0x7   :  { %51 = vmatpush.msra.mxu0 %v46_v4  ;;  %v315_v41 = vld [vmem:[%s496_s2 + $0x38] sm:$0xff]  ;;  %v314_v42 = vld [vmem:[%s496_s2 + $0x30] sm:$0xff]  ;;  %v313_v43 = vld [vmem:[%s496_s2 + $0x28] sm:$0xff]  ;;  %v211_v4 = vsel %vm210_vm8, 5, %v366_v3 }
   0x8   :  { %319 = vmatpush.msra.mxu2 %v45_v5  ;;  %192 = vmatpush.bf16.msra.mxu1 %v315_v41  ;;  %v312_v44 = vld [vmem:[%s496_s2 + $0x20] sm:$0xff]  ;;  %v311_v45 = vld [vmem:[%s496_s2 + $0x18] sm:$0xff]  ;;  %v310_v46 = vld [vmem:[%s496_s2 + $0x10] sm:$0xff]  ;;  %vm212_vm9 = vcmp.le.s32.totalorder %v209_v2, %v211_v4 }
   0x9   :  { %52 = vmatpush.msra.mxu0 %v45_v5  ;;  %v309_v47 = vld [vmem:[%s496_s2 + $0x8] sm:$0xff]  ;;  %v308_v48 = vld [vmem:[%s496_s2] sm:$0xff] }
   0xa   :  { %22 = vperm.xlu0 %338, %v17_v6   ;;  %320 = vmatpush.msra.mxu2 %v44_v7  ;;  %v354_v1 = vld [vmem:[%s495_s3] ss:$0 sm:$0xff] }
   0xb   :  { %53 = vmatpush.msra.mxu0 %v44_v7 }
   0xc   :  { %321 = vmatpush.msra.mxu2 %v43_v8  ;;  %193 = vmatpush.bf16.msra.mxu1 %v314_v42 }
   0xd   :  { %54 = vmatpush.msra.mxu0 %v43_v8 }
   0xe   :  { %322 = vmatpush.msra.mxu2 %v42_v9 }
   0xf   :  { %55 = vmatpush.msra.mxu0 %v42_v9 }
  0x10   :  { %323 = vmatpush.msra.mxu2 %v41_v10  ;;  %194 = vmatpush.bf16.msra.mxu1 %v313_v43 }
  0x11   :  { %56 = vmatpush.msra.mxu0 %v41_v10 }
  0x12   :  { %324 = vmatpush.msra.mxu2 %v40_v11 }
  0x13   :  { %57 = vmatpush.msra.mxu0 %v40_v11 }
  0x14   :  { %325 = vmatpush.msra.mxu2 %v39_v12  ;;  %195 = vmatpush.bf16.msra.mxu1 %v312_v44 }
  0x15   :  { %58 = vmatpush.msra.mxu0 %v39_v12 }
  0x16   :  { %326 = vmatpush.msra.mxu2 %v38_v13 }
  0x17   :  { %59 = vmatpush.msra.mxu0 %v38_v13 }
  0x18   :  { %327 = vmatpush.msra.mxu2 %v37_v14  ;;  %196 = vmatpush.bf16.msra.mxu1 %v311_v45 }
  0x19   :  { %60 = vmatpush.msra.mxu0 %v37_v14 }
  0x1a   :  { %328 = vmatpush.msra.mxu2 %v36_v15 }
  0x1b   :  { %61 = vmatpush.msra.mxu0 %v36_v15 }
  0x1c   :  { %329 = vmatpush.msra.mxu2 %v35_v16  ;;  %197 = vmatpush.bf16.msra.mxu1 %v310_v46 }
  0x1d   :  { %62 = vmatpush.msra.mxu0 %v35_v16 }
  0x1e   :  { %330 = vmatpush.msra.mxu2 %v34_v17 }
  0x1f   :  { %63 = vmatpush.msra.mxu0 %v34_v17 }
  0x20   :  { %331 = vmatpush.msra.mxu2 %v33_v18  ;;  %198 = vmatpush.bf16.msra.mxu1 %v309_v47 }
  0x21   :  { %64 = vmatpush.msra.mxu0 %v33_v18 }
  0x24   :  { %199 = vmatpush.bf16.msra.mxu1 %v308_v48 }
  0x74   :  { %v26_v21 = vpop.permute.xlu0 %25 }
  0x75   :  { %vm28_vm0 = vcmp.eq.s32.totalorder %v447_v20, %v26_v21 }
  0x76   :  { %274 = vmatmul.msk.f32.vlgmr.msra.gmra.mxu2 %vm28_vm0, %v362_v22 }
  0x7c   :  { %v23_v23 = vpop.permute.xlu0 %22 }
  0x7d   :  { %vm27_vm1 = vcmp.eq.s32.totalorder %v447_v20, %v23_v23 }
  0x7e   :  { %273 = vmatmul.msk.f32.vlgmr.msra.gmra.mxu0 %vm27_vm1, %v362_v22 }
  0xf9   :  { %v69_v24 = vpop.f32.mrf.mxu2 }
  0xfa   :  { %v76_v26 = vrot.slane %v69_v24, 1  ;;  %v90_v27 = vrot.slane %v69_v24, 3  ;;  %v83_v37 = vrot.slane %v69_v24, 2 }
  0xfb   :  { %v66_v25 = vpop.f32.mrf.mxu0 }
  0xfc   :  { %v75_v28 = vrot.slane %v66_v25, 1  ;;  %v89_v29 = vrot.slane %v66_v25, 3  ;;  %v82_v36 = vrot.slane %v66_v25, 2 }
  0xfe   :  { %v91_v30 = vsel %vm88_vm2, %v89_v29, %v90_v27  ;;  %v94_v31 = vsel %vm88_vm2, %v90_v27, %v89_v29  ;;  %v77_v32 = vsel %vm74_vm3, %v75_v28, %v76_v26  ;;  %v80_v33 = vsel %vm74_vm3, %v76_v26, %v75_v28 }
  0xff   :  { %v349_v34 = vpack.i.bf16 %v94_v31, %v91_v30  ;;  %v339_v35 = vpack.i.bf16 %v80_v33, %v77_v32  ;;  %v84_v38 = vsel %vm81_vm4, %v82_v36, %v83_v37  ;;  %v87_v39 = vsel %vm81_vm4, %v83_v37, %v82_v36  ;;  %v356_v33 = vld [vmem:[%s495_s3 + $0x2] ss:$0 sm:$0xff] }
 0x100   :  { %v344_v40 = vpack.i.bf16 %v87_v39, %v84_v38 }
 0x101   :  { %350 = vrot.lane.b32.xlu2 %v349_v34, %s363_s1  ;;  %340 = vrot.lane.b32.xlu1 %v339_v35, %s364_s24 }
 0x109   :  { %345 = vrot.lane.b32.xlu1 %v344_v40, %s365_s25 }
 0x15b   :  { %v351_v52 = vpop.permute.xlu2 %350 }
 0x15c   :  { %v353_v56 = vunpack.i.h.bf16 %v351_v52  ;;  %v352_v57 = vunpack.i.l.bf16 %v351_v52 }
 0x173   :  { %v341_v49 = vpop.permute.xlu1 %340 }
 0x174   :  { %v343_v50 = vunpack.i.h.bf16 %v341_v49  ;;  %v342_v51 = vunpack.i.l.bf16 %v341_v49 }
 0x176   :  { %v118_v58 = vsel %vm116_vm5, %v69_v24, %v343_v50  ;;  %v117_v59 = vsel %vm116_vm5, %v66_v25, %v342_v51  ;;  %v355_v25 = vld [vmem:[%s495_s3 + $0x1] ss:$0 sm:$0xff] }
 0x17b   :  { %v346_v53 = vpop.permute.xlu1 %345 }
 0x17c   :  { %v348_v54 = vunpack.i.h.bf16 %v346_v53  ;;  %v347_v55 = vunpack.i.l.bf16 %v346_v53 }
 0x17e   :  { %v120_v60 = vsel %vm119_vm6, %v117_v59, %v347_v55  ;;  %v121_v61 = vsel %vm119_vm6, %v118_v58, %v348_v54 }
 0x17f   :  { %v123_v62 = vsel %vm122_vm7, %v120_v60, %v352_v57  ;;  %v124_v63 = vsel %vm122_vm7, %v121_v61, %v353_v56 }
 0x180   :  { %v125_v0 = vpack.c.bf16 %v124_v63, %v123_v62 }
 0x182   :  { %200 = vmatmul.bf16.vlgmr.msra.gmra.mxu1 %v125_v0 }
 0x1ff   :  { %v201_v5 = vpop.f32.mrf.mxu1 }
 0x200   :  { %v202_v6 = vadd.f32 %v354_v1, %v201_v5 }
 0x202   :  { %v206_v7 = vmax.f32 %v202_v6, 0.0 }
 0x204   :  { %v213_v8 = vsel %vm212_vm9, %v206_v7, 0.0 }
 0x205   :  { %v215_v9 = vsel %vm116_vm5, %v213_v8, -inf }
 0x206   :  { %v216_v10 = vrot.slane %v215_v9, 4 }
 0x207   :  { %v203_v11 = vpop.f32.mrf.mxu1 }
 0x208   :  { %v217_v12 = vmax.f32 %v215_v9, %v216_v10  ;;  %v204_v13 = vadd.f32 %v354_v1, %v203_v11 }
 0x20a   :  { %v207_v14 = vmax.f32 %v204_v13, 0.0  ;;  %v218_v15 = vrot.slane %v217_v12, 2 }
 0x20c   :  { %v214_v16 = vsel %vm212_vm9, %v207_v14, 0.0  ;;  %v219_v19 = vmax.f32 %v217_v12, %v218_v15 }
 0x20d   :  { %v222_v17 = vsel %vm116_vm5, %v214_v16, -inf }
 0x20e   :  { %v223_v18 = vrot.slane %v222_v17, 4  ;;  %v220_v22 = vrot.slane %v219_v19, 1 }
 0x210   :  { %v224_v20 = vmax.f32 %v222_v17, %v223_v18  ;;  %v221_v26 = vmax.f32 %v219_v19, %v220_v22 }
 0x212   :  { %v225_v21 = vrot.slane %v224_v20, 2  ;;  %v232_v29 = vmul.f32 %v355_v25, %v221_v26 }
 0x214   :  { %v226_v23 = vmax.f32 %v224_v20, %v225_v21 }
 0x216   :  { %v227_v24 = vrot.slane %v226_v23, 1 }
 0x218   :  { %v228_v27 = vmax.f32 %v226_v23, %v227_v24 }
 0x21a   :  { %v233_v28 = vmul.f32 %v355_v25, %v228_v27 }
 0x21c   :  { %v236_v30 = vrot.slane %v233_v28, 7 }
 0x21e   :  { %v238_v31 = vsel %vm237_vm10, %v236_v30, %v232_v29 }
 0x21f   :  { %v241_v32 = vsel %vm240_vm11, %v238_v31, 0.0 }
 0x220   :  { %242 = vadd.xlane.f32.xlu2 %v241_v32 }
 0x293   :  { %v243_v34 = vpop.xlane.xlu2 %242 }
 0x294   :  { %v245_v35 = vadd.f32 %v356_v33, %v243_v34 }
 0x296   :  { %v307_v36 = vmul.f32 -1.442695, %v245_v35 }
 0x298   :  { %357 = vpow2.f32 %v307_v36 }
 0x29e   :  { %v358_v37 = vpop.eup %357 }
 0x29f   :  { %v249_v38 = vadd.f32 1.0, %v358_v37 }
 0x2a1   :  { %359 = vrcp.f32 %v249_v38  ;;  %v261_v42 = vand.u32 2147483648, %v249_v38  ;;  %v259_v44 = vand.u32 2147483647, %v249_v38  ;;  %vm255_vm13 = vweird.f32 %v249_v38 }
 0x2a3   :  { %v262_v46 = vor.u32 1.1754944e-38, %v261_v42  ;;  %vm260_vm0 = vcmp.eq.f32.partialorder %v259_v44, 8.507059e+37 }
 0x2a7   :  { %v360_v39 = vpop.eup %359 }
 0x2a8   :  { %v251_v40 = vmul.f32 %v360_v39, %v249_v38  ;;  %vm256_vm12 = vweird.f32 %v360_v39 }
 0x2a9   :  { %vm257_vm15 = vmor %vm255_vm13, %vm256_vm12 }
 0x2aa   :  { %v252_v41 = vsub.f32 1.0, %v251_v40 }
 0x2ac   :  { %v253_v43 = vmul.f32 %v360_v39, %v252_v41 }
 0x2ae   :  { %v254_v45 = vadd.f32 %v360_v39, %v253_v43 }
 0x2b0   :  { %v258_v47 = vsel %vm257_vm15, %v360_v39, %v254_v45 }
 0x2b1   :  { %v263_v48 = vsel %vm260_vm0, %v262_v46, %v258_v47 }
 0x2b2   :  { %266 = vst.msk [vmem:[%s497_s4] sm:$0x3] %vm265_vm14, %v263_v48 }

</bundles_post_ra>
